<compile_context>
chip_gen: v7x
topology: tpu7x:2x2x1
jax: 0.10.0
libtpu: 0.0.40
codegen_flags: <defaults>
</compile_context>

<pallas_src>
import functools

import jax
import jax.numpy as jnp
from jax.experimental import pallas as pl
from jax.experimental.pallas import tpu as pltpu

IN_FEATURES = 4
OUT_FEATURES = 1
LANES = 128
FLAT_LANES = IN_FEATURES * LANES  # 512 flat f32 values per 128 samples

# Rows (of 128 samples each) per grid step.  2048 rows = 262144 samples
# (~5 MiB HBM traffic / step) amortizes the per-step overhead on v5e/v6e/v7x
# while the double-buffered VMEM footprint stays ~10.5 MiB.  Tunable: e.g.
# 4096 on v6e/v7x for even larger steps (still under the 32 MiB limit below).
DEFAULT_ROW_TILE = 2048


def _discriminator_kernel(x_ref, w_ref, b_ref, o_ref):
    """sigmoid(x @ W_struct + b) for one dense batch tile.

    x_ref: VMEM (rows, 512)  flat view of 128 samples x 4 features per row
                             (native (B, 4) memory order, no transpose).
    w_ref: VMEM (512, 128)   structured weights: W[l, c] = w[l % 4] iff l//4==c
                             -> one MXU matmul contracts the 4 features and
                             de-interleaves samples onto dense lanes.
    b_ref: SMEM (1,)         bias scalar.
    o_ref: VMEM (rows, 128)  dense, sample-major output tile.
    """
    z = jnp.dot(x_ref[...], w_ref[...], preferred_element_type=jnp.float32)
    z = z + b_ref[0]
    # sigmoid(z) = 1 / (1 + exp(-z)); exp and the approximate reciprocal both
    # run on the EUP slot, leaving VALU slots free.
    o_ref[...] = pl.reciprocal(1.0 + jnp.exp(-z), approx=True)


@functools.partial(jax.jit, static_argnames=("row_tile",))
def discriminator_forward(x, w, b, *, row_tile=DEFAULT_ROW_TILE):
    """sigmoid(x @ w + b) computed by a dense-layout Pallas TPU kernel.

    x: (B, 4) float32, w: (4, 1) float32, b: (1,) float32  ->  (B, 1) float32
    """
    B = x.shape[0]
    n_rows = -(-B // LANES)                      # rows of 128 samples each
    tile = n_rows if n_rows <= row_tile else row_tile
    num_tiles = -(-n_rows // tile)

    # Flat, zero-copy view of the native (B, 4) buffer.  The pad only exists
    # (and only then costs a copy) when B is not a multiple of 128.
    flat = x.astype(jnp.float32).reshape(-1)     # (4*B,)
    pad = n_rows * FLAT_LANES - flat.shape[0]
    if pad:
        flat = jnp.pad(flat, (0, pad))
    x2d = flat.reshape(n_rows, FLAT_LANES)       # (n_rows, 512)

    # Structured weight: W[l, c] = w[l % 4] if l // 4 == c else 0.  (512, 128)
    w_flat = w.reshape(IN_FEATURES).astype(jnp.float32)
    lane = jnp.arange(FLAT_LANES)
    w_struct = jnp.where(
        (lane[:, None] // IN_FEATURES) == jnp.arange(LANES)[None, :],
        w_flat[lane % IN_FEATURES][:, None],
        jnp.float32(0.0),
    ).astype(jnp.float32)

    bias = b.reshape(OUT_FEATURES).astype(jnp.float32)

    out2d = pl.pallas_call(
        _discriminator_kernel,
        out_shape=jax.ShapeDtypeStruct((n_rows, LANES), jnp.float32),
        grid=(num_tiles,),
        in_specs=[
            # Dense batch tile: (tile, 512); tile is a multiple of 8 or equals
            # the full row count, lane dim 512 is a multiple of 128.
            pl.BlockSpec((tile, FLAT_LANES), lambda i: (i, 0)),
            # Structured weight stays resident (constant block index).
            pl.BlockSpec((FLAT_LANES, LANES), lambda i: (0, 0)),
            # Bias scalar lives in SMEM (no VMEM padding, no per-step DMA).
            pl.BlockSpec(memory_space=pltpu.MemorySpace.SMEM),
        ],
        # Dense, sample-major output tile -> unmasked full-lane stores.
        out_specs=pl.BlockSpec((tile, LANES), lambda i: (i, 0)),
        compiler_params=pltpu.CompilerParams(
            # Batch tiles are independent: shard across both v7x TensorCores.
            dimension_semantics=("parallel",),
            # Headroom for the double-buffered 2048-row tiles on v5e's 16 MiB
            # default scoped VMEM (safe on v6e/v7x as well).
            vmem_limit_bytes=32 * 1024 * 1024,
        ),
        cost_estimate=pl.CostEstimate(
            flops=2 * n_rows * LANES * FLAT_LANES + n_rows * LANES,
            transcendentals=2 * n_rows * LANES,
            bytes_accessed=(n_rows * FLAT_LANES + n_rows * LANES
                            + FLAT_LANES * LANES + OUT_FEATURES) * 4,
        ),
    )(x2d, w_struct, bias)

    # Drop padded samples (free when B % 128 == 0) and restore (B, 1).
    out_flat = out2d.reshape(-1)
    if n_rows * LANES != B:
        out_flat = out_flat[:B]
    return out_flat.reshape(B, OUT_FEATURES)


def init_discriminator_params(key):
    """Deterministic init mimicking nn.Linear(4, 1): U(-1/sqrt(4), 1/sqrt(4))."""
    kw, kb = jax.random.split(key)
    bound = 1.0 / jnp.sqrt(jnp.float32(IN_FEATURES))
    w = jax.random.uniform(
        kw, (IN_FEATURES, OUT_FEATURES), jnp.float32, -bound, bound
    )
    b = jax.random.uniform(kb, (OUT_FEATURES,), jnp.float32, -bound, bound)
    return w, b


# TODO(synk): Discriminator.loss (BCEWithLogitsLoss + generator rollout) is a
# training-time composite, not part of forward(); implemented in plain JAX by
# callers if needed.

if __name__ == "__main__":
    key = jax.random.PRNGKey(0)
    k_x, k_params = jax.random.split(key)
    w, b = init_discriminator_params(k_params)

    # Aligned small batch (multiple of 128 -> fully zero-copy wrapper path).
    batch = 256
    x = jax.random.normal(k_x, (batch, IN_FEATURES), jnp.float32)
    out = jax.block_until_ready(discriminator_forward(x, w, b))
    ref = jax.nn.sigmoid(x @ w + b.reshape(1, OUT_FEATURES))
    assert out.shape == (batch, OUT_FEATURES)
    assert jnp.allclose(out, ref, atol=2e-3, rtol=2e-3)

    # Ragged small batch (exercises the pad / slice tail handling).
    batch2 = 200
    x2 = jax.random.normal(k_x, (batch2, IN_FEATURES), jnp.float32)
    out2 = jax.block_until_ready(discriminator_forward(x2, w, b))
    ref2 = jax.nn.sigmoid(x2 @ w + b.reshape(1, OUT_FEATURES))
    assert out2.shape == (batch2, OUT_FEATURES)
    assert jnp.allclose(out2, ref2, atol=2e-3, rtol=2e-3)

    print("KERNEL_OK")
</pallas_src>

<mosaic_0001>
module attributes {stable_mosaic.version = 11 : i64} {
  func.func @_discriminator_kernel(%arg0: i32, %arg1: memref<2x512xf32, #tpu.memory_space<vmem>>, %arg2: memref<512x128xf32, #tpu.memory_space<vmem>>, %arg3: memref<1xf32, #tpu.memory_space<smem>>, %arg4: memref<2x128xf32, #tpu.memory_space<vmem>>) attributes {dimension_semantics = [#tpu.dimension_semantics<parallel>], iteration_bounds = array<i64: 1>, scalar_prefetch = 0 : i64, scratch_operands = 0 : i64, tpu.core_type = #tpu.core_type<tc>, window_params = [{transform_indices = @transform_0, window_bounds = array<i64: 2, 512>}, {pipeline_mode = #tpu.pipeline_mode<synchronous>, transform_indices = @transform_1, window_bounds = array<i64: 512, 128>}, {transform_indices = @transform_2, window_bounds = array<i64: 1>}, {transform_indices = @transform_3, window_bounds = array<i64: 2, 128>}]} {
    %c0 = arith.constant 0 : index
    %c0_0 = arith.constant 0 : index
    %0 = vector.load %arg1[%c0, %c0_0] : memref<2x512xf32, #tpu.memory_space<vmem>>, vector<2x512xf32>
    %c0_1 = arith.constant 0 : index
    %c0_2 = arith.constant 0 : index
    %1 = vector.load %arg2[%c0_1, %c0_2] : memref<512x128xf32, #tpu.memory_space<vmem>>, vector<512x128xf32>
    %cst = arith.constant dense<0.000000e+00> : vector<2x128xf32>
    %2 = tpu.matmul %0, %1, %cst {dimension_numbers = #tpu.dot_dimension_numbers<[1], [0], [0], [1], [0, 0, 1, 1], [], []>} : vector<2x512xf32>, vector<512x128xf32>, vector<2x128xf32> -> vector<2x128xf32>
    %c0_3 = arith.constant 0 : index
    %3 = memref.load %arg3[%c0_3] : memref<1xf32, #tpu.memory_space<smem>>
    %4 = vector.broadcast %3 : f32 to vector<2x128xf32>
    %5 = arith.addf %2, %4 : vector<2x128xf32>
    %cst_4 = arith.constant 0.000000e+00 : f32
    %6 = vector.broadcast %cst_4 : f32 to vector<2x128xf32>
    %7 = arith.subf %6, %5 : vector<2x128xf32>
    %8 = math.exp %7 : vector<2x128xf32>
    %cst_5 = arith.constant 1.000000e+00 : f32
    %9 = vector.broadcast %cst_5 : f32 to vector<2x128xf32>
    %10 = arith.addf %9, %8 : vector<2x128xf32>
    %11 = tpu.reciprocal %10 {approx = true} : vector<2x128xf32> -> vector<2x128xf32>
    %c0_6 = arith.constant 0 : index
    %c0_7 = arith.constant 0 : index
    %12 = vector.load %arg4[%c0_6, %c0_7] : memref<2x128xf32, #tpu.memory_space<vmem>>, vector<2x128xf32>
    tpu.vector_store %arg4[%c0_6, %c0_7], %11 {strides = array<i32>} : memref<2x128xf32, #tpu.memory_space<vmem>>, vector<2x128xf32>,
    return
  }
  func.func @transform_0(%arg0: i32) -> (i32, i32) {
    %c0_i32 = arith.constant 0 : i32
    %c0_i32_0 = arith.constant 0 : i32
    return %arg0, %c0_i32 : i32, i32
  }
  func.func @transform_1(%arg0: i32) -> (i32, i32) {
    %c0_i32 = arith.constant 0 : i32
    %c0_i32_0 = arith.constant 0 : i32
    %c0_i32_1 = arith.constant 0 : i32
    return %c0_i32, %c0_i32_0 : i32, i32
  }
  func.func @transform_2(%arg0: i32) -> i32 {
    %c0_i32 = arith.constant 0 : i32
    %c0_i32_0 = arith.constant 0 : i32
    return %c0_i32 : i32
  }
  func.func @transform_3(%arg0: i32) -> (i32, i32) {
    %c0_i32 = arith.constant 0 : i32
    %c0_i32_0 = arith.constant 0 : i32
    return %arg0, %c0_i32 : i32, i32
  }
}

</mosaic_0001>

<bundles_post_ra>
// kernel: discriminator_forward.1
= control target key start
LH: loop header
LB: loop body
LE: loop exit
PB: predicated region body
PF: predicated region fallthrough
CT: control target
= control target key end

     0   :  { %v430_v47 = vmov 1983009808   ;;  %v88_v49 = vlaneseq  ;;  %s662_s0 = inlined_call_operand.vmem [shape: f32[2,512], index: 0, kind: input, shape index: {}]   ;;  %s663_s1 = inlined_call_operand.vmem [shape: f32[512,128], index: 1, kind: input, shape index: {}]   ;;  %s664_s2 = inlined_call_operand.<no memory space> [shape: f32[1], index: 2, kind: input, shape index: {}]   ;;  %s665_s3 = inlined_call_operand.hbm [shape: f32[2,128], index: 3, kind: output, shape index: {}]  }
   0x1   :  { %v33_v0 = vld [vmem:[%s663_s1 + $0x80] sm:$0xff]  ;;  %v34_v1 = vld [vmem:[%s663_s1 + $0x88] sm:$0xff]  ;;  %v35_v11 = vld [vmem:[%s663_s1 + $0x90] sm:$0xff]  ;;  %v86_v48 = vunpack.c.l.s4 %v430_v47 }
   0x2   :  { %v17_v2 = vld [vmem:[%s663_s1] sm:$0xff]  ;;  %v335_v3 = vpack.c.bf16 %v34_v1, %v33_v0  ;;  %v18_v4 = vld [vmem:[%s663_s1 + $0x8] sm:$0xff]  ;;  %v36_v13 = vld [vmem:[%s663_s1 + $0x98] sm:$0xff]  ;;  %v89_v0 = vshrl.u32 %v88_v49, 7 }
   0x3   :  { %v65_v5 = vld [vmem:[%s663_s1 + $0x180] sm:$0xff]  ;;  %v66_v6 = vld [vmem:[%s663_s1 + $0x188] sm:$0xff]  ;;  %v337_v7 = vpack.c.bf16 %v18_v4, %v17_v2  ;;  %v19_v14 = vld [vmem:[%s663_s1 + $0x10] sm:$0xff]  ;;  %v339_v16 = vpack.c.bf16 %v36_v13, %v35_v11  ;;  %v87_v63 = vunpack.c.0.s8 %v86_v48 }
   0x4   :  { %v367_v8 = vpack.c.bf16 %v66_v6, %v65_v5  ;;  %v49_v9 = vld [vmem:[%s663_s1 + $0x100] sm:$0xff]  ;;  %v50_v10 = vld [vmem:[%s663_s1 + $0x108] sm:$0xff]  ;;  %336 = vmatprep.subr.bf16.mxu0 %v335_v3  ;;  %v20_v15 = vld [vmem:[%s663_s1 + $0x18] sm:$0xff] }
   0x5   :  { %v369_v12 = vpack.c.bf16 %v50_v10, %v49_v9  ;;  %338 = vmatpush3.bf16.msra.mxu0 %v337_v7  ;;  %v341_v17 = vpack.c.bf16 %v20_v15, %v19_v14  ;;  %v67_v18 = vld [vmem:[%s663_s1 + $0x190] sm:$0xff]  ;;  %v68_v19 = vld [vmem:[%s663_s1 + $0x198] sm:$0xff]  ;;  %v37_v23 = vld [vmem:[%s663_s1 + $0xa0] sm:$0xff]  ;;  %v90_v13 = vsub.s32 %v87_v63, %v89_v0 }
   0x6   :  { %368 = vmatprep.subr.bf16.mxu1 %v367_v8  ;;  %v51_v20 = vld [vmem:[%s663_s1 + $0x110] sm:$0xff]  ;;  %v371_v21 = vpack.c.bf16 %v68_v19, %v67_v18  ;;  %v52_v22 = vld [vmem:[%s663_s1 + $0x118] sm:$0xff]  ;;  %v38_v24 = vld [vmem:[%s663_s1 + $0xa8] sm:$0xff]  ;;  %340 = vmatprep.subr.bf16.mxu0 %v339_v16 }
   0x7   :  { %370 = vmatpush3.bf16.msra.mxu1 %v369_v12  ;;  %v373_v25 = vpack.c.bf16 %v52_v22, %v51_v20  ;;  %v343_v26 = vpack.c.bf16 %v38_v24, %v37_v23  ;;  %v21_v27 = vld [vmem:[%s663_s1 + $0x20] sm:$0xff]  ;;  %v22_v28 = vld [vmem:[%s663_s1 + $0x28] sm:$0xff]  ;;  %v39_v35 = vld [vmem:[%s663_s1 + $0xb0] sm:$0xff] }
   0x8   :  { %v69_v29 = vld [vmem:[%s663_s1 + $0x1a0] sm:$0xff]  ;;  %372 = vmatprep.subr.bf16.mxu1 %v371_v21  ;;  %v70_v30 = vld [vmem:[%s663_s1 + $0x1a8] sm:$0xff]  ;;  %v345_v33 = vpack.c.bf16 %v22_v28, %v21_v27  ;;  %v40_v36 = vld [vmem:[%s663_s1 + $0xb8] sm:$0xff] }
   0x9   :  { %v53_v31 = vld [vmem:[%s663_s1 + $0x120] sm:$0xff]  ;;  %v54_v32 = vld [vmem:[%s663_s1 + $0x128] sm:$0xff]  ;;  %342 = vmatpush3.bf16.msra.mxu0 %v341_v17  ;;  %v375_v34 = vpack.c.bf16 %v70_v30, %v69_v29  ;;  %v23_v37 = vld [vmem:[%s663_s1 + $0x30] sm:$0xff]  ;;  %v347_v39 = vpack.c.bf16 %v40_v36, %v39_v35 }
   0xa   :  { %344 = vmatprep.subr.bf16.mxu0 %v343_v26  ;;  %v377_v38 = vpack.c.bf16 %v54_v32, %v53_v31  ;;  %v24_v40 = vld [vmem:[%s663_s1 + $0x38] sm:$0xff]  ;;  %v71_v41 = vld [vmem:[%s663_s1 + $0x1b0] sm:$0xff]  ;;  %v41_v46 = vld [vmem:[%s663_s1 + $0xc0] sm:$0xff] }
   0xb   :  { %374 = vmatpush3.bf16.msra.mxu1 %v373_v25  ;;  %v72_v42 = vld [vmem:[%s663_s1 + $0x1b8] sm:$0xff]  ;;  %v55_v44 = vld [vmem:[%s663_s1 + $0x130] sm:$0xff]  ;;  %v42_v50 = vld [vmem:[%s663_s1 + $0xc8] sm:$0xff]  ;;  %v349_v51 = vpack.c.bf16 %v24_v40, %v23_v37 }
   0xc   :  { %376 = vmatprep.subr.bf16.mxu1 %v375_v34  ;;  %v379_v43 = vpack.c.bf16 %v72_v42, %v71_v41  ;;  %v56_v45 = vld [vmem:[%s663_s1 + $0x138] sm:$0xff]  ;;  %v73_v52 = vld [vmem:[%s663_s1 + $0x1c0] sm:$0xff]  ;;  %v74_v53 = vld [vmem:[%s663_s1 + $0x1c8] sm:$0xff]  ;;  %v351_v55 = vpack.c.bf16 %v42_v50, %v41_v46 }
   0xd   :  { %346 = vmatpush3.bf16.msra.mxu0 %v345_v33  ;;  %v381_v54 = vpack.c.bf16 %v56_v45, %v55_v44  ;;  %v25_v56 = vld [vmem:[%s663_s1 + $0x40] sm:$0xff]  ;;  %v26_v57 = vld [vmem:[%s663_s1 + $0x48] sm:$0xff]  ;;  %v383_v59 = vpack.c.bf16 %v74_v53, %v73_v52  ;;  %v43_v61 = vld [vmem:[%s663_s1 + $0xd0] sm:$0xff] }
   0xe   :  { %348 = vmatprep.subr.bf16.mxu0 %v347_v39  ;;  %v57_v58 = vld [vmem:[%s663_s1 + $0x140] sm:$0xff]  ;;  %v58_v60 = vld [vmem:[%s663_s1 + $0x148] sm:$0xff]  ;;  %v44_v62 = vld [vmem:[%s663_s1 + $0xd8] sm:$0xff]  ;;  %v353_v3 = vpack.c.bf16 %v26_v57, %v25_v56 }
   0xf   :  { %378 = vmatpush3.bf16.msra.mxu1 %v377_v38  ;;  %v75_v1 = vld [vmem:[%s663_s1 + $0x1d0] sm:$0xff]  ;;  %v76_v2 = vld [vmem:[%s663_s1 + $0x1d8] sm:$0xff]  ;;  %v385_v4 = vpack.c.bf16 %v58_v60, %v57_v58  ;;  %v355_v5 = vpack.c.bf16 %v44_v62, %v43_v61  ;;  %v45_v11 = vld [vmem:[%s663_s1 + $0xe0] sm:$0xff] }
  0x10   :  { %380 = vmatprep.subr.bf16.mxu1 %v379_v43  ;;  %v27_v6 = vld [vmem:[%s663_s1 + $0x50] sm:$0xff]  ;;  %v28_v7 = vld [vmem:[%s663_s1 + $0x58] sm:$0xff]  ;;  %v387_v9 = vpack.c.bf16 %v76_v2, %v75_v1  ;;  %v46_v12 = vld [vmem:[%s663_s1 + $0xe8] sm:$0xff] }
  0x11   :  { %350 = vmatpush3.bf16.msra.mxu0 %v349_v51  ;;  %v59_v8 = vld [vmem:[%s663_s1 + $0x150] sm:$0xff]  ;;  %v60_v10 = vld [vmem:[%s663_s1 + $0x158] sm:$0xff]  ;;  %v77_v14 = vld [vmem:[%s663_s1 + $0x1e0] sm:$0xff]  ;;  %v357_v16 = vpack.c.bf16 %v28_v7, %v27_v6  ;;  %v359_v20 = vpack.c.bf16 %v46_v12, %v45_v11 }
  0x12   :  { %352 = vmatprep.subr.bf16.mxu0 %v351_v55  ;;  %v78_v15 = vld [vmem:[%s663_s1 + $0x1e8] sm:$0xff]  ;;  %v29_v17 = vld [vmem:[%s663_s1 + $0x60] sm:$0xff]  ;;  %v389_v19 = vpack.c.bf16 %v60_v10, %v59_v8 }
  0x13   :  { %382 = vmatpush3.bf16.msra.mxu1 %v381_v54  ;;  %v30_v18 = vld [vmem:[%s663_s1 + $0x68] sm:$0xff]  ;;  %v61_v21 = vld [vmem:[%s663_s1 + $0x160] sm:$0xff] }
  0x14   :  { %384 = vmatprep.subr.bf16.mxu1 %v383_v59  ;;  %v16_v22 = vld [vmem:[%s662_s0] sm:$0xff] }
  0x15   :  { %354 = vmatpush3.bf16.msra.mxu0 %v353_v3 }
  0x16   :  { %356 = vmatprep.subr.bf16.mxu0 %v355_v5 }
  0x17   :  { %386 = vmatpush3.bf16.msra.mxu1 %v385_v4 }
  0x18   :  { %9 = vsyncpa [#allocation4], 0  ;;  %388 = vmatprep.subr.bf16.mxu1 %v387_v9  ;;  %v391_v23 = vpack.c.bf16 %v78_v15, %v77_v14  ;;  %v62_v24 = vld [vmem:[%s663_s1 + $0x168] sm:$0xff]  ;;  %v47_v25 = vld [vmem:[%s663_s1 + $0xf0] sm:$0xff]  ;;  %v91_v27 = vrot.slane %v16_v22, %v90_v13  ;;  %v84_v28 = vcombine.high %v16_v22, %v16_v22  ;;  %v361_v31 = vpack.c.bf16 %v30_v18, %v29_v17 }
  0x19   :  { %v48_v26 = vld [vmem:[%s663_s1 + $0xf8] sm:$0xff]  ;;  %v79_v29 = vld [vmem:[%s663_s1 + $0x1f0] sm:$0xff]  ;;  %358 = vmatpush3.bf16.msra.mxu0 %v357_v16  ;;  %v393_v34 = vpack.c.bf16 %v62_v24, %v61_v21  ;;  %v82_v45 = vstv %s664_s2 }
  0x1a   :  { %v80_v30 = vld [vmem:[%s663_s1 + $0x1f8] sm:$0xff]  ;;  %v99_v32 = vcombine.high %v91_v27, %v91_v27  ;;  %v98_v33 = vrot.slane %v84_v28, %v90_v13  ;;  %360 = vmatprep.subr.bf16.mxu0 %v359_v20  ;;  %v363_v35 = vpack.c.bf16 %v48_v26, %v47_v25  ;;  %v31_v36 = vld [vmem:[%s663_s1 + $0x70] sm:$0xff] }
  0x1b   :  { %390 = vmatpush3.bf16.msra.mxu1 %v389_v19  ;;  %v32_v37 = vld [vmem:[%s663_s1 + $0x78] sm:$0xff]  ;;  %v395_v38 = vpack.c.bf16 %v80_v30, %v79_v29  ;;  %v63_v39 = vld [vmem:[%s663_s1 + $0x170] sm:$0xff] }
  0x1c   :  { %392 = vmatprep.subr.bf16.mxu1 %v391_v23  ;;  %v64_v40 = vld [vmem:[%s663_s1 + $0x178] sm:$0xff]  ;;  %169 = vmatprep.mubr.f32.mxu0 %v99_v32  ;;  %v100_v41 = vcombine.high %v98_v33, %v98_v33  ;;  %v365_v42 = vpack.c.bf16 %v32_v37, %v31_v36  ;;  %s431_s1 = smov [#allocation3]  }
  0x1d   :  { %362 = vmatpush3.bf16.msra.mxu0 %v361_v31  ;;  %v397_v43 = vpack.c.bf16 %v64_v40, %v63_v39  ;;  %s257_s8 = sshll.u32 %s431_s1, 4  ;;  %s258_s8 = int_to_ptr.vmem [resolvable:$true] %s257_s8 }
  0x1e   :  { %239 = vmatprep.mubr.f32.mxu1 %v100_v41  ;;  %364 = vmatprep.subr.bf16.mxu0 %v363_v35  ;;  %s406_s9 = scalar_lea.vmem %s258_s8, 32  ;;  %p411_p1 = scmp.lt.s32.totalorder %s258_s8, %s258_s8 }
  0x1f   :  { %394 = vmatpush3.bf16.msra.mxu1 %v393_v34  ;;  %p407_p0 = scmp.ne.s32.totalorder %s258_s8, %s406_s9  ;;  %p412_p2 = scmp.lt.s32.totalorder %s406_s9, %s406_s9 }
  0x20   :  { %396 = vmatprep.subr.bf16.mxu1 %v395_v38 }
  0x21   :  { %366 = vmatpush3.bf16.msra.mxu0 %v365_v42  ;;  %p413_p3 = por %p412_p2, %p411_p1 }
  0x23   :  { %398 = vmatpush3.bf16.msra.mxu1 %v397_v43  ;;  %p414_p4 = pnand %p413_p3, %p407_p0 }
  0x24   :  { %170 = vmatmul.mubr.f32.vlgmr.msra.gmra.mrb[0].mxu0 %v91_v27 }
  0x26   :  { %240 = vmatmul.mubr.f32.vlgmr.msra.gmra.mrb[0].mxu1 %v98_v33 }
  0xf7   :  { %v297_v44 = vpop.f32.mrb[0].mxu0 }
  0xf8   :  { %v298_v46 = vpop.f32.mrb[1].mxu0 }
  0xf9   :  { %v332_v47 = vpop.f32.mrb[0].mxu1  ;;  %v299_v48 = vadd.f32 %v298_v46, %v297_v44 }
  0xfa   :  { %v333_v49 = vpop.f32.mrb[1].mxu1 }
  0xfb   :  { %v334_v50 = vadd.f32 %v333_v49, %v332_v47  ;;  %v172_v51 = vadd.f32 %v299_v48, %v82_v45 }
  0xfd   :  { %v242_v52 = vadd.f32 %v334_v50, %v172_v51 }
  0xff   :  { %v245_v53 = vsub.f32 0.0, %v242_v52 }
 0x101   :  { %v246_v54 = vmul.f32 1.442695, %v245_v53 }
 0x103   :  { %402 = vpow2.f32 %v246_v54 }
 0x10d   :  { %v403_v55 = vpop.eup %402 }
 0x10e   :  { %v248_v56 = vadd.f32 1.0, %v403_v55 }
 0x110   :  { %404 = vrcp.f32 %v248_v56 }
 0x11a   :  { %v405_v57 = vpop.eup %404 }
 0x11b   :  { %250 = vst [vmem:[#allocation3] sm:$0x3] %v405_v57 }
 0x11c   :  { %417 = shalt.err (!%p414_p4)
}
 0x11d   :  { %s418_s11 = scalar_lea.hbm %s665_s3, 32 }
 0x11e   :  { %p419_p5 = scmp.ne.s32.totalorder %s665_s3, %s418_s11  ;;  %p422_p6 = scmp.lt.u32.totalorder %s418_s11, %s665_s3 }
 0x120   :  { %p424_p7 = pnand %p422_p6, %p419_p5 }
 0x122   :  { %427 = shalt.err (!%p424_p7)
}
 0x123   :  { %260 = dma.vmem_to_hbm [thread:$0]  %s258_s8, 32, %s665_s3, [#allocation4]  }
 0x124   :  { %428 = dma.done.wait [#allocation4], 32  }
 0x125   :  { %429 = vsyncadd [#allocation4], 4294967264 }
 0x126   :  { %264 = vsyncpa [#allocation4], 1 }

</bundles_post_ra>
